<compile_context>
chip_gen: v5e
topology: v5e:2x2
jax: 0.10.0
libtpu: 0.0.40
codegen_flags: <defaults>
</compile_context>

<pallas_src>
import math
import jax
import jax.numpy as jnp
from jax.experimental import pallas as pl
from jax.experimental.pallas import tpu as pltpu


# ---------------------------------------------------------------------------
# Hardware / sizing helpers
# ---------------------------------------------------------------------------

def _vmem_capacity_bytes():
    """Physical VMEM per TensorCore; conservative 64 MiB (v7x) if the query fails."""
    cap = 64 << 20
    try:
        info = pltpu.get_tpu_info()
        cap = int(getattr(info, "vmem_capacity_bytes", cap)) or cap
    except Exception:
        pass
    return cap


def _sublane_pack(dtype):
    """Sublane packing granularity: 8 (f32), 16 (bf16/f16), 32 (int8/fp8)."""
    return max(8, 32 // jnp.dtype(dtype).itemsize)


def _choose_lane_chunk(n_flat, bytes_per_lane_step, budget_bytes):
    """Largest divisor of n_flat that is a multiple of 128 whose double-buffered per-step
    footprint fits budget_bytes.  Returns None when n_flat is not 128-aligned (caller
    falls back to full-row blocks).  Fails loudly if even the smallest chunk can't fit."""
    if n_flat % 128 != 0:
        return None
    best = None
    for c in range(128, n_flat + 1, 128):
        if n_flat % c:
            continue
        if c * bytes_per_lane_step <= budget_bytes:
            best = c
    if best is None:
        raise ValueError(
            "prefix_forward: no 128-aligned lane chunk of n_flat=%d fits the VMEM budget "
            "(%d bytes); shapes are too large for this kernel." % (n_flat, budget_bytes))
    return best


def _choose_head_chunk(H, footprint_fn, pack, budget_bytes):
    """Largest legal head chunk whose double-buffered footprint fits the budget.
    Hc == H is always layout-legal (full dim); smaller chunks must divide H and be a
    multiple of the dtype sublane pack.  Fails loudly instead of silently overshooting."""
    if footprint_fn(H) <= budget_bytes:
        return H
    for hc in range(H - 1, 0, -1):
        if H % hc == 0 and hc % pack == 0 and footprint_fn(hc) <= budget_bytes:
            return hc
    raise ValueError(
        "prefix_forward: K/V blocks do not fit the VMEM budget even with maximal head "
        "chunking (H=%d, pack=%d, budget=%d bytes)." % (H, pack, budget_bytes))


# ---------------------------------------------------------------------------
# Kernels
# ---------------------------------------------------------------------------

def _make_seq_tiled_kernel(n_bulk):
    """Seq-tiled path: grid axis 1 iterates bulk K/V chunks, then prefix tail chunk(s)."""

    def kernel(k_ref, v_ref, pk_ref, pv_ref, ko_ref, vo_ref):
        s = pl.program_id(1)

        @pl.when(s < n_bulk)          # bulk K/V copy: full-width lane-dense stores
        def _():
            ko_ref[...] = k_ref[...]
            vo_ref[...] = v_ref[...]

        @pl.when(s >= n_bulk)         # prefix tail: written at the start of its own block
        def _():
            ko_ref[...] = pk_ref[...]
            vo_ref[...] = pv_ref[...]

    return kernel


def _make_fullrow_kernel(n_flat, l_flat):
    """Fallback path: whole (N+L)*Dh row per block, prefix appended at lane offset n_flat."""

    def kernel(k_ref, v_ref, pk_ref, pv_ref, ko_ref, vo_ref):
        ko_ref[0, :, 0:n_flat] = k_ref[0, :, :]
        ko_ref[0, :, n_flat:n_flat + l_flat] = pk_ref[0, :, :]
        vo_ref[0, :, 0:n_flat] = v_ref[0, :, :]
        vo_ref[0, :, n_flat:n_flat + l_flat] = pv_ref[0, :, :]

    return kernel


# ---------------------------------------------------------------------------
# Forward wrapper
# ---------------------------------------------------------------------------

def prefix_forward(x, q, k, v, prefix_key, prefix_value, num_heads):
    """JAX/Pallas implementation of Prefix.forward.

    Args:
      x: (B, N, C)  (only used for shape semantics, as in the PyTorch module)
      q, k, v: (B, H, N, Dh)
      prefix_key, prefix_value: (1, L, C) parameters
      num_heads: H
    Returns:
      (q, k_cat, v_cat) with k_cat / v_cat of shape (B, H, N + L, Dh)
    """
    B, N, C = x.shape
    H = num_heads
    Dh = C // H
    L = prefix_key.shape[1]

    # Glue: (1, L, C) -> (L, H, Dh) -> (H, L, Dh) -> (H, L*Dh); cast so the in-kernel
    # path is a pure copy.
    pk = jnp.transpose(prefix_key.reshape(L, H, Dh), (1, 0, 2)).reshape(H, L * Dh).astype(k.dtype)
    pv = jnp.transpose(prefix_value.reshape(L, H, Dh), (1, 0, 2)).reshape(H, L * Dh).astype(v.dtype)

    # Flatten (seq, head_dim) into the lane axis (contiguous minor-dim collapse: free).
    k_flat = k.reshape(B, H, N * Dh)
    v_flat = v.reshape(B, H, N * Dh)

    n_flat, l_flat = N * Dh, L * Dh
    o_flat = n_flat + l_flat
    ik = jnp.dtype(k.dtype).itemsize
    iv = jnp.dtype(v.dtype).itemsize

    cap = _vmem_capacity_bytes()
    budget = int(cap * 0.6)     # v7x (64 MiB) -> ~38 MiB; v5e/v6e (128 MiB) -> ~77 MiB
    ceiling = int(cap * 0.85)   # explicit vmem_limit never above ~85% of physical

    out_shape = (jax.ShapeDtypeStruct((B, H, o_flat), k.dtype),
                 jax.ShapeDtypeStruct((B, H, o_flat), v.dtype))

    # Per-lane, per-step cost of the seq-tiled path: {k,v} x {in, out, prefix} blocks,
    # each (1, H, fc), each double-buffered.
    bytes_per_lane = 2 * 3 * H * (ik + iv)
    fc = _choose_lane_chunk(n_flat, bytes_per_lane, budget)

    if fc is not None:
        # ------------------ primary path: sequence (lane-axis) tiling ------------------
        n_bulk = n_flat // fc
        n_tail = -(-l_flat // fc)            # ceil: prefix tail chunks
        n_s = n_bulk + n_tail
        l_pad = n_tail * fc

        # Zero-pad the (tiny) prefix slab to a whole number of chunks; the padding maps to
        # out-of-bounds output lanes and is masked on writeback.
        if l_pad != l_flat:
            pk = jnp.pad(pk, ((0, 0), (0, l_pad - l_flat)))
            pv = jnp.pad(pv, ((0, 0), (0, l_pad - l_flat)))
        pk3 = pk.reshape(1, H, l_pad)
        pv3 = pv.reshape(1, H, l_pad)

        # Grid (B outer, seq inner): the tail steps' clamped K/V index equals the previous
        # step's index, so the big K/V blocks are never re-fetched; only the tiny prefix
        # block is re-fetched once per batch.
        kv_spec = pl.BlockSpec((1, H, fc), lambda b, s: (b, 0, jnp.minimum(s, n_bulk - 1)))
        pfx_spec = pl.BlockSpec((1, H, fc), lambda b, s: (0, 0, jnp.maximum(s - n_bulk, 0)))
        out_spec = pl.BlockSpec((1, H, fc), lambda b, s: (b, 0, s))

        step_bytes = bytes_per_lane * fc
        vmem_limit = int(min(max(step_bytes + (8 << 20), 32 << 20), ceiling))

        k_cat_flat, v_cat_flat = pl.pallas_call(
            _make_seq_tiled_kernel(n_bulk),
            out_shape=out_shape,
            grid_spec=pltpu.PrefetchScalarGridSpec(
                num_scalar_prefetch=0,
                grid=(B, n_s),
                in_specs=[kv_spec, kv_spec, pfx_spec, pfx_spec],
                out_specs=[out_spec, out_spec],
            ),
            compiler_params=pltpu.CompilerParams(
                dimension_semantics=("parallel", "parallel"),
                vmem_limit_bytes=vmem_limit,
            ),
        )(k_flat, v_flat, pk3, pv3)
    else:
        # --------------- fallback path: n_flat not 128-aligned, full-row blocks ---------------
        pack = max(_sublane_pack(k.dtype), _sublane_pack(v.dtype))

        def footprint(hc):
            return 2 * hc * (n_flat + l_flat + o_flat) * (ik + iv)

        Hc = _choose_head_chunk(H, footprint, pack, budget)
        n_hc = H // Hc

        pk3 = pk.reshape(1, H, l_flat)
        pv3 = pv.reshape(1, H, l_flat)

        # Heads outer, batch inner: prefix block index depends only on the outer axis, so it
        # stays VMEM-resident across the inner batch loop.
        kv_spec = pl.BlockSpec((1, Hc, n_flat), lambda h, b: (b, h, 0))
        pfx_spec = pl.BlockSpec((1, Hc, l_flat), lambda h, b: (0, h, 0))
        out_spec = pl.BlockSpec((1, Hc, o_flat), lambda h, b: (b, h, 0))

        vmem_limit = int(min(max(footprint(Hc) + (8 << 20), 32 << 20), ceiling))

        k_cat_flat, v_cat_flat = pl.pallas_call(
            _make_fullrow_kernel(n_flat, l_flat),
            out_shape=out_shape,
            grid_spec=pltpu.PrefetchScalarGridSpec(
                num_scalar_prefetch=0,
                grid=(n_hc, B),
                in_specs=[kv_spec, kv_spec, pfx_spec, pfx_spec],
                out_specs=[out_spec, out_spec],
            ),
            compiler_params=pltpu.CompilerParams(
                dimension_semantics=("parallel", "parallel"),
                vmem_limit_bytes=vmem_limit,
            ),
        )(k_flat, v_flat, pk3, pv3)

    k_cat = k_cat_flat.reshape(B, H, N + L, Dh)
    v_cat = v_cat_flat.reshape(B, H, N + L, Dh)
    return q, k_cat, v_cat


# ---------------------------------------------------------------------------
# Parameter init + demo / self-check
# ---------------------------------------------------------------------------

def xavier_uniform(key, shape, dtype=jnp.float32):
    """xavier_uniform matching torch's fan computation for a (1, L, C) tensor."""
    fan_out = shape[0] * shape[2]
    fan_in = shape[1] * shape[2]
    bound = math.sqrt(6.0 / (fan_in + fan_out))
    return jax.random.uniform(key, shape, dtype=dtype, minval=-bound, maxval=bound)


def _reference(x, q, k, v, prefix_key, prefix_value, H):
    B, N, C = x.shape
    L = prefix_key.shape[1]
    Dh = C // H
    pk_exp = jnp.broadcast_to(prefix_key, (B, L, C)).reshape(B, L, H, Dh).transpose(0, 2, 1, 3)
    pv_exp = jnp.broadcast_to(prefix_value, (B, L, C)).reshape(B, L, H, Dh).transpose(0, 2, 1, 3)
    k_e = jnp.concatenate([k, pk_exp.astype(k.dtype)], axis=2)
    v_e = jnp.concatenate([v, pv_exp.astype(v.dtype)], axis=2)
    return q, k_e, v_e


def _run_case(B, N, C, H, L):
    Dh = C // H
    root = jax.random.PRNGKey(0)
    kx, kq, kk, kv, kpk, kpv = jax.random.split(root, 6)

    x = jax.random.normal(kx, (B, N, C), dtype=jnp.float32)
    q = jax.random.normal(kq, (B, H, N, Dh), dtype=jnp.float32)
    k = jax.random.normal(kk, (B, H, N, Dh), dtype=jnp.float32)
    v = jax.random.normal(kv, (B, H, N, Dh), dtype=jnp.float32)
    prefix_key = xavier_uniform(kpk, (1, L, C))
    prefix_value = xavier_uniform(kpv, (1, L, C))

    q_out, k_out, v_out = prefix_forward(x, q, k, v, prefix_key, prefix_value, H)
    jax.block_until_ready((q_out, k_out, v_out))

    q_exp, k_exp, v_exp = _reference(x, q, k, v, prefix_key, prefix_value, H)
    assert q_out.shape == (B, H, N, Dh)
    assert k_out.shape == (B, H, N + L, Dh)
    assert v_out.shape == (B, H, N + L, Dh)
    assert jnp.allclose(q_out, q_exp)
    assert jnp.allclose(k_out, k_exp)
    assert jnp.allclose(v_out, v_exp)


if __name__ == "__main__":
    # Primary seq-tiled path: N*Dh = 128 (128-aligned lane chunks).
    _run_case(B=2, N=16, C=32, H=4, L=8)
    # Fallback full-row path: N*Dh = 80 (not 128-aligned).
    _run_case(B=2, N=10, C=32, H=4, L=8)
    print("KERNEL_OK")
</pallas_src>

<mosaic_0001>
module attributes {stable_mosaic.version = 11 : i64} {
  func.func @kernel(%arg0: i32, %arg1: i32, %arg2: memref<1x4x128xf32, #tpu.memory_space<vmem>>, %arg3: memref<1x4x128xf32, #tpu.memory_space<vmem>>, %arg4: memref<1x4x128xf32, #tpu.memory_space<vmem>>, %arg5: memref<1x4x128xf32, #tpu.memory_space<vmem>>, %arg6: memref<1x4x128xf32, #tpu.memory_space<vmem>>, %arg7: memref<1x4x128xf32, #tpu.memory_space<vmem>>) attributes {dimension_semantics = [#tpu.dimension_semantics<parallel>, #tpu.dimension_semantics<parallel>], iteration_bounds = array<i64: 2, 2>, scalar_prefetch = 0 : i64, scratch_operands = 0 : i64, tpu.core_type = #tpu.core_type<tc>, window_params = [{transform_indices = @transform_0, window_bounds = array<i64: 1, 4, 128>}, {transform_indices = @transform_1, window_bounds = array<i64: 1, 4, 128>}, {transform_indices = @transform_2, window_bounds = array<i64: 1, 4, 128>}, {transform_indices = @transform_3, window_bounds = array<i64: 1, 4, 128>}, {transform_indices = @transform_4, window_bounds = array<i64: 1, 4, 128>}, {transform_indices = @transform_5, window_bounds = array<i64: 1, 4, 128>}]} {
    %c1_i32 = arith.constant 1 : i32
    %0 = arith.cmpi slt, %arg1, %c1_i32 : i32
    %1 = arith.extui %0 : i1 to i32
    %c0_i32 = arith.constant 0 : i32
    %2 = arith.cmpi ne, %1, %c0_i32 : i32
    scf.if %2 {
      %c0 = arith.constant 0 : index
      %c0_2 = arith.constant 0 : index
      %c0_3 = arith.constant 0 : index
      %6 = vector.load %arg2[%c0, %c0_2, %c0_3] : memref<1x4x128xf32, #tpu.memory_space<vmem>>, vector<1x4x128xf32>
      %c0_4 = arith.constant 0 : index
      %c0_5 = arith.constant 0 : index
      %c0_6 = arith.constant 0 : index
      %7 = vector.load %arg6[%c0_4, %c0_5, %c0_6] : memref<1x4x128xf32, #tpu.memory_space<vmem>>, vector<1x4x128xf32>
      tpu.vector_store %arg6[%c0_4, %c0_5, %c0_6], %6 {strides = array<i32>} : memref<1x4x128xf32, #tpu.memory_space<vmem>>, vector<1x4x128xf32>,
      %c0_7 = arith.constant 0 : index
      %c0_8 = arith.constant 0 : index
      %c0_9 = arith.constant 0 : index
      %8 = vector.load %arg3[%c0_7, %c0_8, %c0_9] : memref<1x4x128xf32, #tpu.memory_space<vmem>>, vector<1x4x128xf32>
      %c0_10 = arith.constant 0 : index
      %c0_11 = arith.constant 0 : index
      %c0_12 = arith.constant 0 : index
      %9 = vector.load %arg7[%c0_10, %c0_11, %c0_12] : memref<1x4x128xf32, #tpu.memory_space<vmem>>, vector<1x4x128xf32>
      tpu.vector_store %arg7[%c0_10, %c0_11, %c0_12], %8 {strides = array<i32>} : memref<1x4x128xf32, #tpu.memory_space<vmem>>, vector<1x4x128xf32>,
    } else {
    }
    %c1_i32_0 = arith.constant 1 : i32
    %3 = arith.cmpi sge, %arg1, %c1_i32_0 : i32
    %4 = arith.extui %3 : i1 to i32
    %c0_i32_1 = arith.constant 0 : i32
    %5 = arith.cmpi ne, %4, %c0_i32_1 : i32
    scf.if %5 {
      %c0 = arith.constant 0 : index
      %c0_2 = arith.constant 0 : index
      %c0_3 = arith.constant 0 : index
      %6 = vector.load %arg4[%c0, %c0_2, %c0_3] : memref<1x4x128xf32, #tpu.memory_space<vmem>>, vector<1x4x128xf32>
      %c0_4 = arith.constant 0 : index
      %c0_5 = arith.constant 0 : index
      %c0_6 = arith.constant 0 : index
      %7 = vector.load %arg6[%c0_4, %c0_5, %c0_6] : memref<1x4x128xf32, #tpu.memory_space<vmem>>, vector<1x4x128xf32>
      tpu.vector_store %arg6[%c0_4, %c0_5, %c0_6], %6 {strides = array<i32>} : memref<1x4x128xf32, #tpu.memory_space<vmem>>, vector<1x4x128xf32>,
      %c0_7 = arith.constant 0 : index
      %c0_8 = arith.constant 0 : index
      %c0_9 = arith.constant 0 : index
      %8 = vector.load %arg5[%c0_7, %c0_8, %c0_9] : memref<1x4x128xf32, #tpu.memory_space<vmem>>, vector<1x4x128xf32>
      %c0_10 = arith.constant 0 : index
      %c0_11 = arith.constant 0 : index
      %c0_12 = arith.constant 0 : index
      %9 = vector.load %arg7[%c0_10, %c0_11, %c0_12] : memref<1x4x128xf32, #tpu.memory_space<vmem>>, vector<1x4x128xf32>
      tpu.vector_store %arg7[%c0_10, %c0_11, %c0_12], %8 {strides = array<i32>} : memref<1x4x128xf32, #tpu.memory_space<vmem>>, vector<1x4x128xf32>,
    } else {
    }
    return
  }
  func.func @transform_0(%arg0: i32, %arg1: i32) -> (i32, i32, i32) {
    %c0_i32 = arith.constant 0 : i32
    %0 = arith.minsi %arg1, %c0_i32 : i32
    %c0_i32_0 = arith.constant 0 : i32
    %c0_i32_1 = arith.constant 0 : i32
    return %arg0, %c0_i32_0, %0 : i32, i32, i32
  }
  func.func @transform_1(%arg0: i32, %arg1: i32) -> (i32, i32, i32) {
    %c0_i32 = arith.constant 0 : i32
    %0 = arith.minsi %arg1, %c0_i32 : i32
    %c0_i32_0 = arith.constant 0 : i32
    %c0_i32_1 = arith.constant 0 : i32
    return %arg0, %c0_i32_0, %0 : i32, i32, i32
  }
  func.func @transform_2(%arg0: i32, %arg1: i32) -> (i32, i32, i32) {
    %c1_i32 = arith.constant 1 : i32
    %0 = arith.subi %arg1, %c1_i32 : i32
    %c0_i32 = arith.constant 0 : i32
    %1 = arith.maxsi %0, %c0_i32 : i32
    %c0_i32_0 = arith.constant 0 : i32
    %c0_i32_1 = arith.constant 0 : i32
    %c0_i32_2 = arith.constant 0 : i32
    return %c0_i32_0, %c0_i32_1, %1 : i32, i32, i32
  }
  func.func @transform_3(%arg0: i32, %arg1: i32) -> (i32, i32, i32) {
    %c1_i32 = arith.constant 1 : i32
    %0 = arith.subi %arg1, %c1_i32 : i32
    %c0_i32 = arith.constant 0 : i32
    %1 = arith.maxsi %0, %c0_i32 : i32
    %c0_i32_0 = arith.constant 0 : i32
    %c0_i32_1 = arith.constant 0 : i32
    %c0_i32_2 = arith.constant 0 : i32
    return %c0_i32_0, %c0_i32_1, %1 : i32, i32, i32
  }
  func.func @transform_4(%arg0: i32, %arg1: i32) -> (i32, i32, i32) {
    %c0_i32 = arith.constant 0 : i32
    %c0_i32_0 = arith.constant 0 : i32
    return %arg0, %c0_i32, %arg1 : i32, i32, i32
  }
  func.func @transform_5(%arg0: i32, %arg1: i32) -> (i32, i32, i32) {
    %c0_i32 = arith.constant 0 : i32
    %c0_i32_0 = arith.constant 0 : i32
    return %arg0, %c0_i32, %arg1 : i32, i32, i32
  }
}

</mosaic_0001>

<bundles_post_ra>
// kernel: tpu_custom_call.1
= control target key start
LH: loop header
LB: loop body
LE: loop exit
PB: predicated region body
PF: predicated region fallthrough
CT: control target
= control target key end

     0   :  { %s1513_s0 = inlined_call_operand.hbm [shape: f32[2,4,128], index: 0, kind: input, shape index: {}]   ;;  %s1514_s1 = inlined_call_operand.hbm [shape: f32[2,4,128], index: 1, kind: input, shape index: {}]   ;;  %s1515_s2 = inlined_call_operand.hbm [shape: f32[1,4,128], index: 2, kind: input, shape index: {}]   ;;  %s1516_s3 = inlined_call_operand.hbm [shape: f32[1,4,128], index: 3, kind: input, shape index: {}]   ;;  %s1517_s4 = inlined_call_operand.hbm [shape: f32[2,4,192], index: 4, kind: output, shape index: {0}]   ;;  %s1518_s5 = inlined_call_operand.hbm [shape: f32[2,4,192], index: 5, kind: output, shape index: {1}]  }
   0x1   :  { %1531 = sst [smem:[#allocation29_spill]] %s1514_s1 }
   0x2   :  { %1532 = sst [smem:[#allocation30_spill]] %s1517_s4 }
   0x3   :  { %1533 = sst [smem:[#allocation31_spill]] %s1518_s5 }
   0x4   :  { %11 = vsyncpa [#allocation3], 0 }
   0x5   :  { %13 = vsyncpa [#allocation3 + $0x1], 0 }
   0x6   :  { %14 = vsyncpa [#allocation6], 0 }
   0x7   :  { %16 = vsyncpa [#allocation6 + $0x1], 0 }
   0x8   :  { %17 = vsyncpa [#allocation9], 0 }
   0x9   :  { %19 = vsyncpa [#allocation9 + $0x1], 0 }
   0xa   :  { %20 = vsyncpa [#allocation4], 0 }
   0xb   :  { %22 = vsyncpa [#allocation4 + $0x1], 0 }
   0xc   :  { %23 = vsyncpa [#allocation12], 0 }
   0xd   :  { %25 = vsyncpa [#allocation12 + $0x1], 0  ;;  %s1192_s18 = smov 0   ;;  %s1194_s19 = smov 0  }
   0xe   :  { %s1196_s20 = smov 0   ;;  %s1198_s21 = smov 0  }
   0xf   :  { %s1200_s22 = smov 0   ;;  %s1202_s23 = smov 0  }
  0x10   :  { %s1204_s24 = smov 0   ;;  %s1206_s25 = smov 0  }
  0x11   :  { %s1208_s26 = smov 0   ;;  %s1210_s27 = smov 0  }
  0x12   :  { %s1212_s28 = smov 0   ;;  %s1214_s29 = smov 0  }
  0x13   :  { %s1216_s30 = smov 0  }
  0x14 LB: > { %1534 = sst [smem:[#allocation19_spill]] %s1110_s18  ;;  %s1256_s6 = sadd.s32 4294967295, %s1158_s30   ;;  %s1158_s30 = sphi %s1216_s30, %s31_s30   ;;  %s1154_s29 = sphi %s1214_s29, %s1568_s29   ;;  %s1150_s28 = sphi %s1212_s28, %s1567_s28   ;;  %s1146_s27 = sphi %s1210_s27, %s1577_s27   ;;  %s1142_s26 = sphi %s1208_s26, %s1576_s26   ;;  %s1138_s25 = sphi %s1206_s25, %s1575_s25   ;;  %s1134_s24 = sphi %s1204_s24, %s1574_s24   ;;  %s1130_s23 = sphi %s1202_s23, %s1573_s23   ;;  %s1126_s22 = sphi %s1200_s22, %s1486_s22   ;;  %s1122_s21 = sphi %s1198_s21, %s1572_s21   ;;  %s1118_s20 = sphi %s1196_s20, %s1563_s20   ;;  %s1114_s19 = sphi %s1194_s19, %s1571_s19   ;;  %s1110_s18 = sphi %s1192_s18, %s1570_s18  }
  0x15   : > { %1535 = sst [smem:[#allocation20_spill]] %s1118_s20  ;;  %s40_s8 = sadd.s32 1, %s1150_s28 }
  0x16   : > { %1536 = sst [smem:[#allocation21_spill]] %s1150_s28  ;;  %s43_s9 = sadd.s32 1, %s1154_s29 }
  0x17   : > { %1537 = sst [smem:[#allocation22_spill]] %s1154_s29  ;;  %p41_p0 = scmp.ge.s32.totalorder %s40_s8, 2 }
  0x18   : > { %1538 = sst [smem:[#allocation23_spill]] %s1158_s30  ;;  %s56_s10 = sadd.s32 1, %s1138_s25 }
  0x19   : > { %p63_p1 = scmp.ne.s32.totalorder %s1138_s25, %s1134_s24  ;;  %s1579_s8 = smov (%p41_p0, %s40_s8), 0 }
  0x1a   : > { %1539 = sst [smem:[#allocation24_spill]] %s1579_s8  ;;  %s1581_s9 = smov (!%p41_p0, %s43_s9), %s1154_s29 }
  0x1b   : > { %p45_p2 = scmp.ge.s32.totalorder %s1581_s9, 2  ;;  %p64_p3 = scmp.eq.s32.totalorder %s1158_s30, 0 }
  0x1c   : > { %p69_p4 = scmp.ne.s32.totalorder %s1134_s24, %s1130_s23  ;;  %p70_p6 = scmp.eq.s32.totalorder %s1256_s6, 0 }
  0x1d   : > { %s1583_s9 = smov (%p45_p2, %s1581_s9), 0  ;;  %p1273_p5 = por %p64_p3, %p63_p1 }
  0x1e   : > { %1540 = sst [smem:[#allocation25_spill]] %s1583_s9  ;;  %s51_s11 = ssub.s32 %s1154_s29, %s1583_s9 }
  0x1f   : > { %p1107_p7 = scmp.ne.s32.totalorder %s1126_s22, 0  ;;  %p54_p8 = scmp.eq.s32.totalorder %s51_s11, 0 }
  0x20   : > { %p1279_p9 = por %p70_p6, %p69_p4  ;;  %p133_p11 = scmp.ne.s32.totalorder %s1126_s22, %s1122_s21 }
  0x21   : > { %p1283_p10 = por %p1107_p7, %p64_p3  ;;  %s176_s17 = ssub.s32 %s1150_s28, %s1579_s8 }
  0x22   : > { %s1290_s15 = scalar_select %p54_p8, %s1138_s25, %s56_s10  }
  0x23   : > { %p1292_p12 = por %p133_p11, %p70_p6  ;;  %s177_s23 = sor.u32 %s176_s17, %s51_s11 }
  0x24   : > { %1544 = sst [smem:[#allocation26_spill]] %s1290_s15  ;;  %s180_s7 = sadd.s32 1, %s1118_s20 }
  0x25   : > { %p178_p13 = scmp.eq.s32.totalorder %s177_s23, 0  ;;  %p190_p0 = scmp.ne.s32.totalorder %s1118_s20, %s1114_s19 }
  0x26   : > { %p191_p1 = scmp.eq.s32.totalorder %s1256_s6, 3  ;;  %p196_p2 = scmp.ne.s32.totalorder %s1114_s19, %s1110_s18 }
  0x27   : > { %s1305_s9 = scalar_select %p178_p13, %s1118_s20, %s180_s7  }
  0x28   : > { %p1307_p3 = por %p191_p1, %p190_p0  ;;  %s1548_s10 = sadd.s32 4294967294, %s1158_s30  }
  0x29   : > { %1546 = sst [smem:[#allocation27_spill]] %s1305_s9  ;;  %p197_p4 = scmp.eq.s32.totalorder %s1548_s10, 3 }
  0x2a   : > { %p737_p6 = scmp.lt.s32.totalorder %s1158_s30, 4  ;;  %s1525_s11 = sand.u32 1, %s1138_s25  }
  0x2b   : > { %p1314_p7 = por %p197_p4, %p196_p2  ;;  %s1321_s17 = sshll.u32 %s1525_s11, 2 }
  0x2c   : > { %s679_s7 = sshll.u32 %s1154_s29, 2  ;;  %p1328_p8 = pnand %p737_p6, %p1273_p5 }
  0x2d   : > { %s1549_s8 = scalar_select %p1314_p7, 1, 0 }
  0x2e   : > { %s267_s10 = sand.u32 1, %s1158_s30   ;;  %s1552_s1 = sld [smem:[#allocation29_spill]] }
  0x2f   : > { %1550 = sst [smem:[#allocation28_spill]] %s1549_s8  ;;  %s271_s20 = scalar_lea.vmem [#allocation5], %s1321_s17 }
  0x30   : > { %s282_s8 = sshll.u32 %s271_s20, 4  ;;  %p1341_p11 = pnand %p737_p6, %p1283_p10  ;;  %s283_s8 = int_to_ptr.vmem [resolvable:$true] %s282_s8 }
  0x31   : > { %s1345_s11 = scalar_lea.sflag [#allocation6], %s267_s10  ;;  %p855_p13 = pneg %p1328_p8 }
  0x34   : > { %s278_s9 = scalar_lea.hbm %s1552_s1, %s679_s7 }
  0x35   : > { %s280_s18 = sshll.u32 %s278_s9, 4  ;;  %s858_s9 = scalar_lea.hbm %s1552_s1, 8  ;;  %s281_s18 = int_to_ptr.hbm [resolvable:$true] %s280_s18 }
  0x36   : > { %s851_s29 = sshra.s32 %s281_s18, 4  ;;  %s852_s29 = int_to_ptr.hbm [resolvable:$true] %s851_s29 }
  0x37   : > { %s853_s5 = scalar_lea.hbm %s852_s29, 4 }
  0x38   : > { %p854_p5 = scmp.ne.s32.totalorder %s852_s29, %s853_s5  ;;  %p860_p10 = scmp.lt.s32.totalorder %s858_s9, %s853_s5 }
  0x3a   : > { %p856_p0 = pnand %p855_p13, %p854_p5 }
  0x3c   : > { %p857_p1 = pneg %p856_p0 }
  0x3e   : > { %p862_p2 = pnand %p860_p10, %p857_p1 }
  0x40   : > { %865 = shalt.err (!%p862_p2)
}
  0x41   : > { %723 = dma.hbm_to_vmem [thread:$0]  (!%p1328_p8), %s281_s18, 64, %s283_s8, %s1345_s11  }
  0x42   : > { %p688_p4 = scmp.ge.s32.totalorder %s1158_s30, 1  ;;  %p331_p6 = scmp.lt.s32.totalorder %s1158_s30, 5 }
  0x43   : > { %s256_s5 = scalar_lea.hbm %s1513_s0, %s679_s7  ;;  %s249_s10 = scalar_lea.vmem [#allocation2], %s1321_s17 }
  0x44   : > { %p1360_p5 = pnand %p688_p4, %p331_p6  ;;  %s260_s20 = sshll.u32 %s249_s10, 4  ;;  %s261_s20 = int_to_ptr.vmem [resolvable:$true] %s260_s20 }
  0x45   : > { %s258_s28 = sshll.u32 %s256_s5, 4  ;;  %s1555_s9 = sand.u32 1, %s1138_s25   ;;  %s259_s28 = int_to_ptr.hbm [resolvable:$true] %s258_s28 }
  0x46   : > { %s246_s1 = scalar_lea.sflag [#allocation3], %s1555_s9  ;;  %s881_s4 = sshra.s32 %s259_s28, 4  ;;  %s882_s4 = int_to_ptr.hbm [resolvable:$true] %s881_s4 }
  0x47   : > { %s883_s18 = scalar_lea.hbm %s882_s4, 4  ;;  %s888_s14 = scalar_lea.hbm %s1513_s0, 8 }
  0x48   : > { %p884_p0 = scmp.ne.s32.totalorder %s882_s4, %s883_s18  ;;  %p890_p2 = scmp.lt.s32.totalorder %s888_s14, %s883_s18 }
  0x4a   : > { %p886_p1 = pnand %p884_p0, %p855_p13 }
  0x4c   : > { %p887_p10 = pneg %p886_p1 }
  0x4e   : > { %p892_p4 = pnand %p890_p2, %p887_p10 }
  0x50   : > { %895 = shalt.err (!%p892_p4)
}
  0x51   : > { %720 = dma.hbm_to_vmem [thread:$0]  (!%p1328_p8), %s259_s28, 64, %s261_s20, %s246_s1  }
  0x52   : > { %s1160_s17 = smov [#allocation7]   ;;  %s302_s5 = sshll.u32 %s1515_s2, 4  ;;  %s303_s5 = int_to_ptr.hbm [resolvable:$true] %s302_s5 }
  0x53   : > { %s304_s7 = sshll.u32 %s1160_s17, 4  ;;  %s911_s10 = sshra.s32 %s303_s5, 4  ;;  %s305_s7 = int_to_ptr.vmem [resolvable:$true] %s304_s7  ;;  %s912_s10 = int_to_ptr.hbm [resolvable:$true] %s911_s10 }
  0x54   : > { %s913_s30 = scalar_lea.hbm %s912_s10, 4  ;;  %p915_p6 = pneg %p1341_p11 }
  0x55   : > { %p914_p13 = scmp.ne.s32.totalorder %s912_s10, %s913_s30  ;;  %p919_p8 = scmp.lt.s32.totalorder %s912_s10, %s1515_s2 }
  0x57   : > { %p916_p0 = pnand %p915_p6, %p914_p13 }
  0x59   : > { %p917_p1 = pneg %p916_p0 }
  0x5b   : > { %p922_p10 = pnand %p919_p8, %p917_p1 }
  0x5d   : > { %925 = shalt.err (!%p922_p10)
}
  0x5e   : > { %726 = dma.hbm_to_vmem [thread:$0]  (!%p1341_p11), %s303_s5, 64, %s305_s7, %s1345_s11  }
  0x5f   : > { %s324_s9 = sshll.u32 %s1516_s3, 4  ;;  %s1161_s18 = smov [#allocation8]   ;;  %s325_s9 = int_to_ptr.hbm [resolvable:$true] %s324_s9 }
  0x60   : > { %s326_s8 = sshll.u32 %s1161_s18, 4  ;;  %s941_s14 = sshra.s32 %s325_s9, 4  ;;  %s327_s8 = int_to_ptr.vmem [resolvable:$true] %s326_s8  ;;  %s942_s14 = int_to_ptr.hbm [resolvable:$true] %s941_s14 }
  0x61   : > { %s943_s17 = scalar_lea.hbm %s942_s14, 4  ;;  %p949_p0 = scmp.lt.s32.totalorder %s942_s14, %s1516_s3 }
  0x62   : > { %p944_p2 = scmp.ne.s32.totalorder %s942_s14, %s943_s17 }
  0x64   : > { %p946_p4 = pnand %p944_p2, %p915_p6 }
  0x66   : > { %p947_p13 = pneg %p946_p4 }
  0x68   : > { %p952_p1 = pnand %p949_p0, %p947_p13 }
  0x6a   : > { %955 = shalt.err (!%p952_p1)
}
  0x6b   : > { %729 = dma.hbm_to_vmem [thread:$0]  (!%p1341_p11), %s325_s9, 64, %s327_s8, [#allocation9]  }
  0x6c   : > { %335 = sbr.rel (%p1360_p5) target bundleno = 178 (0xb2), region = 36  ;;  %s337_s11 = sand.u32 (!%p1360_p5), 1, %s1134_s24  }
  0x6d   : > { %s689_s7 = sshll.u32 (!%p1360_p5), %s337_s11, 2  ;;  %s338_s5 = scalar_lea.sflag (!%p1360_p5), [#allocation3], %s337_s11 }
  0x6e   : > { %s341_s10 = scalar_lea.vmem (!%p1360_p5), [#allocation2], %s689_s7 }
  0x71   : > { %1084 = dma.done.wait (%p1279_p9), %s338_s5, 64  }
  0x72   : > { %1086 = vsyncadd (%p1279_p9), %s338_s5, 4294967232  ;;  %s347_s30 = sand.u32 1, %s1256_s6   ;;  %s351_s12 = scalar_lea.vmem [#allocation5], %s689_s7 }
  0x73   : > { %s348_s23 = scalar_lea.sflag [#allocation6], %s347_s30 }
  0x74   : > { %1088 = dma.done.wait (%p1279_p9), %s348_s23, 64  }
  0x75   : > { %1090 = vsyncadd (%p1279_p9), %s348_s23, 4294967232  ;;  %s359_s29 = sand.u32 1, %s1126_s22  }
  0x76   : > { %s691_s1 = sshll.u32 %s359_s29, 2 }
  0x77   : > { %s361_s20 = scalar_lea.vmem [#allocation7], %s691_s1 }
  0x78   : > { %1092 = dma.done.wait (%p1292_p12), %s348_s23, 64  }
  0x79   : > { %1094 = vsyncadd (%p1292_p12), %s348_s23, 4294967232  ;;  %s368_s28 = scalar_lea.sflag [#allocation9], %s359_s29  ;;  %s371_s6 = scalar_lea.vmem [#allocation8], %s691_s1 }
  0x7a   : > { %1096 = dma.done.wait (%p1292_p12), %s368_s28, 64  }
  0x7b   : > { %1098 = vsyncadd (%p1292_p12), %s368_s28, 4294967232  ;;  %s1425_s13 = sand.u32 1, %s1114_s19   ;;  %p695_p9 = scmp.ge.s32.totalorder %s1142_s26, 1 }
  0x7c   : > { %s693_s9 = sshll.u32 %s1425_s13, 2 }
  0x7d   : > { %s411_s18 = scalar_lea.vmem [#allocation10], %s693_s9  ;;  %s1428_s8 = scalar_lea.vmem [#allocation11], %s693_s9 }
  0x7e   : > { %432 = sbr.rel (%p695_p9) target bundleno = 134 (0x86), region = 56 }
  0x83   : > { %v433_v0 = vld [vmem:[%s341_s10] sm:$0xf]  ;;  %v435_v1 = vld [vmem:[%s351_s12] sm:$0xf] }
  0x84   : > { %434 = vst [vmem:[%s411_s18] sm:$0xf] %v433_v0 }
  0x85   : > { %436 = vst [vmem:[%s1428_s8] sm:$0xf] %v435_v1 }
  0x86 PF: > { %p696_p11 = scmp.lt.s32.totalorder %s1142_s26, 1 }
  0x88   : > { %440 = sbr.rel (%p696_p11) target bundleno = 144 (0x90), region = 60 }
  0x8d   : > { %v441_v2 = vld [vmem:[%s361_s20] sm:$0xf]  ;;  %v443_v3 = vld [vmem:[%s371_s6] sm:$0xf] }
  0x8e   : > { %442 = vst [vmem:[%s411_s18] sm:$0xf] %v441_v2 }
  0x8f   : > { %444 = vst [vmem:[%s1428_s8] sm:$0xf] %v443_v3 }
  0x90 PF: > { %s699_s16 = sshll.u32 %s1146_s27, 1  ;;  %s465_s17 = sshll.u32 %s411_s18, 4  ;;  %s466_s17 = int_to_ptr.vmem [resolvable:$true] %s465_s17 }
  0x91   : > { %s461_s14 = sadd.s32 %s1142_s26, %s699_s16  ;;  %s1556_s7 = sld [smem:[#allocation30_spill]] }
  0x92   : > { %s700_s15 = sshll.u32 %s461_s14, 2  ;;  %s1557_s12 = sld [smem:[#allocation31_spill]] }
  0x93   : > { %s481_s1 = sshll.u32 %s1428_s8, 4  ;;  %s446_s20 = scalar_lea.sflag [#allocation4], %s1425_s13  ;;  %s482_s1 = int_to_ptr.vmem [resolvable:$true] %s481_s1 }
  0x97   : > { %s463_s5 = scalar_lea.hbm %s1556_s7, %s700_s15  ;;  %s991_s9 = scalar_lea.hbm %s1556_s7, 16 }
  0x98   : > { %s467_s10 = sshll.u32 %s463_s5, 4  ;;  %s479_s29 = scalar_lea.hbm %s1557_s12, %s700_s15  ;;  %s468_s10 = int_to_ptr.hbm [resolvable:$true] %s467_s10 }
  0x99   : > { %s985_s28 = sshra.s32 %s468_s10, 4  ;;  %s986_s28 = int_to_ptr.hbm [resolvable:$true] %s985_s28 }
  0x9a   : > { %s987_s6 = scalar_lea.hbm %s986_s28, 4  ;;  %p992_p8 = scmp.lt.s32.totalorder %s986_s28, %s1556_s7 }
  0x9b   : > { %p988_p12 = scmp.ne.s32.totalorder %s986_s28, %s987_s6  ;;  %p993_p10 = scmp.lt.s32.totalorder %s991_s9, %s987_s6 }
  0x9d   : > { %p989_p5 = pnand %p988_p12, %p1307_p3  ;;  %p994_p2 = por %p993_p10, %p992_p8 }
  0x9f   : > { %p990_p6 = pneg %p989_p5 }
  0xa1   : > { %p995_p4 = pnand %p994_p2, %p990_p6 }
  0xa3   : > { %998 = shalt.err (!%p995_p4)
}
  0xa4   : > { %713 = dma.vmem_to_hbm [thread:$0]  (%p1307_p3), %s466_s17, 64, %s468_s10, %s446_s20  }
  0xa5   : > { %s483_s8 = sshll.u32 %s479_s29, 4  ;;  %s451_s14 = scalar_lea.sflag [#allocation12], %s1425_s13  ;;  %s484_s8 = int_to_ptr.hbm [resolvable:$true] %s483_s8 }
  0xa6   : > { %s1013_s15 = sshra.s32 %s484_s8, 4  ;;  %s1019_s30 = scalar_lea.hbm %s1557_s12, 16  ;;  %s1014_s15 = int_to_ptr.hbm [resolvable:$true] %s1013_s15 }
  0xa7   : > { %s1015_s4 = scalar_lea.hbm %s1014_s15, 4  ;;  %p1020_p9 = scmp.lt.s32.totalorder %s1014_s15, %s1557_s12 }
  0xa8   : > { %p1016_p13 = scmp.ne.s32.totalorder %s1014_s15, %s1015_s4  ;;  %p1021_p11 = scmp.lt.s32.totalorder %s1019_s30, %s1015_s4 }
  0xaa   : > { %p1017_p0 = pnand %p1016_p13, %p1307_p3  ;;  %p1022_p12 = por %p1021_p11, %p1020_p9 }
  0xac   : > { %p1018_p1 = pneg %p1017_p0 }
  0xae   : > { %p1023_p5 = pnand %p1022_p12, %p1018_p1 }
  0xb0   : > { %1026 = shalt.err (!%p1023_p5)
}
  0xb1   : > { %714 = dma.vmem_to_hbm [thread:$0]  (%p1307_p3), %s482_s1, 64, %s484_s8, %s451_s14  }
  0xb2 PF: > { %s1558_s13 = sld [smem:[#allocation23_spill]] }
  0xb3   : > { %s1559_s17 = sld [smem:[#allocation19_spill]] }
  0xb8   : > { %p738_p6 = scmp.ge.s32.totalorder %s1558_s13, 2 }
  0xb9   : > { %s495_s29 = sand.u32 1, %s1559_s17  }
  0xba   : > { %p731_p8 = pnand %p738_p6, %p1314_p7  ;;  %s496_s20 = scalar_lea.sflag [#allocation4], %s495_s29 }
  0xbc   : > { %p732_p10 = pneg %p731_p8 }
  0xbe   : > { %1100 = dma.done.wait (%p732_p10), %s496_s20, 64  }
  0xbf   : > { %1102 = vsyncadd (%p732_p10), %s496_s20, 4294967232  ;;  %s506_s6 = scalar_lea.sflag [#allocation12], %s495_s29 }
  0xc0   : > { %1104 = dma.done.wait (%p732_p10), %s506_s6, 64  }
  0xc1   : > { %1106 = vsyncadd (%p732_p10), %s506_s6, 4294967232  ;;  %s31_s30 = sadd.s32 1, %s1558_s13   ;;  %s1562_s1 = sld [smem:[#allocation20_spill]] }
  0xc2   : > { %p1470_p2 = scmp.ge.s32.totalorder %s31_s30, 6   ;;  %s1563_s20 = sld [smem:[#allocation27_spill]] }
  0xc3   : > { %s1564_s26 = sld [smem:[#allocation26_spill]]  ;;  %s1570_s18 = smov %s1114_s19 }
  0xc4   : > { %s1565_s27 = sld [smem:[#allocation21_spill]]  ;;  %s1572_s21 = smov %s1126_s22 }
  0xc5   : > { %s1566_s9 = sld [smem:[#allocation22_spill]]  ;;  %s1486_s22 = smov 0  }
  0xc6   : > { %s1567_s28 = sld [smem:[#allocation24_spill]]  ;;  %s1573_s23 = smov %s1134_s24 }
  0xc7   : > { %s1568_s29 = sld [smem:[#allocation25_spill]]  ;;  %s1571_s19 = smov %s1562_s1 }
  0xc8   : > { %s1574_s24 = smov %s1138_s25  ;;  %30 = sbr.rel (!%p1470_p2) target bundleno = 20 (0x14), region = 143 }
  0xc9   : > { %s1575_s25 = smov %s1564_s26 }
  0xca   : > { %s1576_s26 = smov %s1565_s27 }
  0xcb   : > { %s1577_s27 = smov %s1566_s9 }
  0xcd   :  { %512 = vsyncpa [#allocation3], 1 }
  0xce   :  { %514 = vsyncpa [#allocation3 + $0x1], 1 }
  0xcf   :  { %515 = vsyncpa [#allocation6], 1 }
  0xd0   :  { %517 = vsyncpa [#allocation6 + $0x1], 1 }
  0xd1   :  { %518 = vsyncpa [#allocation9], 1 }
  0xd2   :  { %520 = vsyncpa [#allocation9 + $0x1], 1 }
  0xd3   :  { %521 = vsyncpa [#allocation4], 1 }
  0xd4   :  { %523 = vsyncpa [#allocation4 + $0x1], 1 }
  0xd5   :  { %524 = vsyncpa [#allocation12], 1 }
  0xd6   :  { %526 = vsyncpa [#allocation12 + $0x1], 1 }

</bundles_post_ra>
